<compile_context>
chip_gen: v7x
topology: tpu7x:2x2x1
jax: 0.10.0
libtpu: 0.0.40
codegen_flags: <defaults>
</compile_context>

<pallas_src>
import jax
import jax.numpy as jnp
from jax.experimental import pallas as pl
from jax.experimental.pallas import tpu as pltpu

# torchvision F.rgb_to_grayscale coefficients (ITU-R 601-2 luma transform)
_R_W = 0.2989
_G_W = 0.587
_B_W = 0.114

_LANES = 128
# ~3 MiB per f32 input block (3 * TS * 128 * 4 B); double-buffered in/out stays well
# under every chip's scoped-VMEM default (including v7x's 32 MiB).
_TS_TARGET = 2048


def _grayscale_kernel(img_ref, out_ref):
    # img_ref: (3, TS, 128) block in VMEM; out_ref: (C_out, TS, 128) block in VMEM.
    r = img_ref[0].astype(jnp.float32)   # (TS, 128) full-sublane / full-lane slab
    g = img_ref[1].astype(jnp.float32)
    b = img_ref[2].astype(jnp.float32)
    gray = (_R_W * r + _G_W * g + _B_W * b).astype(out_ref.dtype)  # (TS, 128)
    # Write each output channel (1 or 3) as a full unmasked (TS, 128) slab.
    for c in range(out_ref.shape[0]):
        out_ref[c] = gray


def _pick_tile(S, B):
    """Rows-of-128 per spatial tile: multiple of 8, ~_TS_TARGET, evenly splitting S."""
    if S <= 8:
        return S  # block dim equals full array dim -> no (8,128) divisibility needed
    min_tiles = 2 if B == 1 else 1  # guarantee >= 2 grid points for v7x megacore
    nt = max(pl.cdiv(S, _TS_TARGET), min_tiles)
    ts = pl.cdiv(S, nt)
    return -(-ts // 8) * 8  # round up to a multiple of 8 sublanes


def ext_grayscale(img, lbl, num_output_channels=1):
    """Pallas equivalent of ExtGrayscale.forward(img, lbl).

    img: [B, 3, H, W] float array.  lbl: passed through untouched.
    """
    assert img.ndim == 4 and img.shape[1] == 3, "expected [B, 3, H, W]"
    assert num_output_channels in (1, 3)
    B, _, H, W = img.shape
    HW = H * W
    itemsize = jnp.dtype(img.dtype).itemsize

    img_flat = img.reshape(B, 3, HW)
    pad = (-HW) % _LANES
    if pad:
        # TODO(synk): ragged tail (HW % 128 != 0) still costs a full pad + slice copy;
        # handling the tail in-kernel would need manual DMA.  Typical segmentation
        # crops (HW % 128 == 0) take the zero-copy path below.
        img_flat = jnp.pad(img_flat, ((0, 0), (0, 0), (0, pad)))
    HW_p = HW + pad
    S = HW_p // _LANES
    img_tiled = img_flat.reshape(B, 3, S, _LANES)  # lane-dense, full-sublane layout

    TS = _pick_tile(S, B)
    num_tiles = pl.cdiv(S, TS)

    cost = pl.CostEstimate(
        flops=5 * B * HW_p,  # 3 mul + 2 add per pixel
        transcendentals=0,
        bytes_accessed=B * HW_p * itemsize * (3 + num_output_channels),
    )

    out_tiled = pl.pallas_call(
        _grayscale_kernel,
        out_shape=jax.ShapeDtypeStruct((B, num_output_channels, S, _LANES), img.dtype),
        grid=(B, num_tiles),
        in_specs=[
            pl.BlockSpec((None, 3, TS, _LANES), lambda bi, ti: (bi, 0, ti, 0)),
        ],
        out_specs=pl.BlockSpec(
            (None, num_output_channels, TS, _LANES), lambda bi, ti: (bi, 0, ti, 0)
        ),
        compiler_params=pltpu.CompilerParams(
            dimension_semantics=("parallel", "parallel"),
            vmem_limit_bytes=32 * 1024 * 1024,
        ),
        cost_estimate=cost,
    )(img_tiled)

    out_flat = out_tiled.reshape(B, num_output_channels, HW_p)
    if pad:
        out_flat = out_flat[:, :, :HW]
    out = out_flat.reshape(B, num_output_channels, H, W)
    return out, lbl


def _reference(img, num_output_channels):
    gray = (_R_W * img[:, 0] + _G_W * img[:, 1] + _B_W * img[:, 2])[:, None]
    if num_output_channels == 3:
        gray = jnp.broadcast_to(gray, (img.shape[0], 3, img.shape[2], img.shape[3]))
    return gray


if __name__ == "__main__":
    key = jax.random.PRNGKey(0)
    k_img, k_lbl, k_img2, k_img3 = jax.random.split(key, 4)

    # Main case: aligned spatial size (16*16 = 256 = 2*128 lanes), zero-copy path.
    B, C, H, W = 2, 3, 16, 16
    img = jax.random.uniform(k_img, (B, C, H, W), dtype=jnp.float32)
    lbl = jax.random.randint(k_lbl, (B, H, W), 0, 21, dtype=jnp.int32)

    out1, lbl_out1 = ext_grayscale(img, lbl, num_output_channels=1)
    out1 = jax.block_until_ready(out1)
    out3, lbl_out3 = ext_grayscale(img, lbl, num_output_channels=3)
    out3 = jax.block_until_ready(out3)

    assert out1.shape == (B, 1, H, W)
    assert out3.shape == (B, 3, H, W)
    assert jnp.allclose(out1, _reference(img, 1), atol=1e-5)
    assert jnp.allclose(out3, _reference(img, 3), atol=1e-5)
    assert (lbl_out1 == lbl).all() and (lbl_out3 == lbl).all()

    # Unaligned spatial size exercises the padding path (13*13 = 169 -> pad to 256).
    H2, W2 = 13, 13
    img2 = jax.random.uniform(k_img2, (1, 3, H2, W2), dtype=jnp.float32)
    lbl2 = jnp.zeros((1, H2, W2), dtype=jnp.int32)
    out_u, _ = ext_grayscale(img2, lbl2, num_output_channels=1)
    out_u = jax.block_until_ready(out_u)
    assert out_u.shape == (1, 1, H2, W2)
    assert jnp.allclose(out_u, _reference(img2, 1), atol=1e-5)

    # B=1 with multi-tile spatial split and a partial final block
    # (48*48 = 2304 = 18*128; S=18 -> 2 tiles of TS=16, last block masked).
    H3, W3 = 48, 48
    img3 = jax.random.uniform(k_img3, (1, 3, H3, W3), dtype=jnp.float32)
    lbl3 = jnp.zeros((1, H3, W3), dtype=jnp.int32)
    out_p, _ = ext_grayscale(img3, lbl3, num_output_channels=3)
    out_p = jax.block_until_ready(out_p)
    assert out_p.shape == (1, 3, H3, W3)
    assert jnp.allclose(out_p, _reference(img3, 3), atol=1e-5)

    # TODO(synk): torchvision also accepts uint8 images with round-to-nearest
    # semantics; this kernel targets float inputs (as in the segmentation pipeline).
    print("KERNEL_OK")
</pallas_src>

<mosaic_0001>
module attributes {stable_mosaic.version = 11 : i64} {
  func.func @_grayscale_kernel(%arg0: i32, %arg1: i32, %arg2: memref<1x3x2x128xf32, #tpu.memory_space<vmem>>, %arg3: memref<1x1x2x128xf32, #tpu.memory_space<vmem>>) attributes {dimension_semantics = [#tpu.dimension_semantics<parallel>, #tpu.dimension_semantics<parallel>], iteration_bounds = array<i64: 2, 1>, scalar_prefetch = 0 : i64, scratch_operands = 0 : i64, tpu.core_type = #tpu.core_type<tc>, window_params = [{transform_indices = @transform_0, window_bounds = array<i64: 1, 3, 2, 128>}, {transform_indices = @transform_1, window_bounds = array<i64: 1, 1, 2, 128>}]} {
    %c0 = arith.constant 0 : index
    %c0_0 = arith.constant 0 : index
    %c0_1 = arith.constant 0 : index
    %c0_2 = arith.constant 0 : index
    %0 = vector.load %arg2[%c0, %c0_0, %c0_1, %c0_2] : memref<1x3x2x128xf32, #tpu.memory_space<vmem>>, vector<1x1x2x128xf32>
    %1 = vector.shape_cast %0 : vector<1x1x2x128xf32> to vector<2x128xf32>
    %c0_3 = arith.constant 0 : index
    %c1 = arith.constant 1 : index
    %c0_4 = arith.constant 0 : index
    %c0_5 = arith.constant 0 : index
    %2 = vector.load %arg2[%c0_3, %c1, %c0_4, %c0_5] : memref<1x3x2x128xf32, #tpu.memory_space<vmem>>, vector<1x1x2x128xf32>
    %3 = vector.shape_cast %2 : vector<1x1x2x128xf32> to vector<2x128xf32>
    %c0_6 = arith.constant 0 : index
    %c2 = arith.constant 2 : index
    %c0_7 = arith.constant 0 : index
    %c0_8 = arith.constant 0 : index
    %4 = vector.load %arg2[%c0_6, %c2, %c0_7, %c0_8] : memref<1x3x2x128xf32, #tpu.memory_space<vmem>>, vector<1x1x2x128xf32>
    %5 = vector.shape_cast %4 : vector<1x1x2x128xf32> to vector<2x128xf32>
    %cst = arith.constant 2.989000e-01 : f32
    %6 = vector.broadcast %cst : f32 to vector<2x128xf32>
    %7 = arith.mulf %6, %1 : vector<2x128xf32>
    %cst_9 = arith.constant 5.870000e-01 : f32
    %8 = vector.broadcast %cst_9 : f32 to vector<2x128xf32>
    %9 = arith.mulf %8, %3 : vector<2x128xf32>
    %10 = arith.addf %7, %9 : vector<2x128xf32>
    %cst_10 = arith.constant 1.140000e-01 : f32
    %11 = vector.broadcast %cst_10 : f32 to vector<2x128xf32>
    %12 = arith.mulf %11, %5 : vector<2x128xf32>
    %13 = arith.addf %10, %12 : vector<2x128xf32>
    %c0_11 = arith.constant 0 : index
    %c0_12 = arith.constant 0 : index
    %c0_13 = arith.constant 0 : index
    %c0_14 = arith.constant 0 : index
    %14 = vector.load %arg3[%c0_11, %c0_12, %c0_13, %c0_14] : memref<1x1x2x128xf32, #tpu.memory_space<vmem>>, vector<1x1x2x128xf32>
    %15 = vector.shape_cast %14 : vector<1x1x2x128xf32> to vector<2x128xf32>
    %16 = vector.shape_cast %13 : vector<2x128xf32> to vector<1x1x2x128xf32>
    tpu.vector_store %arg3[%c0_11, %c0_12, %c0_13, %c0_14], %16 {strides = array<i32>} : memref<1x1x2x128xf32, #tpu.memory_space<vmem>>, vector<1x1x2x128xf32>,
    return
  }
  func.func @transform_0(%arg0: i32, %arg1: i32) -> (i32, i32, i32, i32) {
    %c0_i32 = arith.constant 0 : i32
    %c0_i32_0 = arith.constant 0 : i32
    %c0_i32_1 = arith.constant 0 : i32
    return %arg0, %c0_i32, %arg1, %c0_i32_0 : i32, i32, i32, i32
  }
  func.func @transform_1(%arg0: i32, %arg1: i32) -> (i32, i32, i32, i32) {
    %c0_i32 = arith.constant 0 : i32
    %c0_i32_0 = arith.constant 0 : i32
    %c0_i32_1 = arith.constant 0 : i32
    return %arg0, %c0_i32, %arg1, %c0_i32_0 : i32, i32, i32, i32
  }
}

</mosaic_0001>

<bundles_post_ra>
// kernel: tpu_custom_call.1
= control target key start
LH: loop header
LB: loop body
LE: loop exit
PB: predicated region body
PF: predicated region fallthrough
CT: control target
= control target key end

     0   :  { %6 = vsyncpa [#allocation3], 0  ;;  %s641_s0 = inlined_call_operand.hbm [shape: f32[2,3,2,128], index: 0, kind: input, shape index: {}]   ;;  %s642_s1 = inlined_call_operand.hbm [shape: f32[2,1,2,128], index: 1, kind: output, shape index: {}]  }
   0x1   :  { %8 = vsyncpa [#allocation3 + $0x1], 0 }
   0x2   :  { %9 = vsyncpa [#allocation4], 0 }
   0x3   :  { %11 = vsyncpa [#allocation4 + $0x1], 0  ;;  %s467_s6 = smov 0   ;;  %s469_s7 = smov 0  }
   0x4   :  { %s471_s8 = smov 0   ;;  %s473_s9 = smov 0  }
   0x5   :  { %s475_s10 = smov 0   ;;  %s477_s11 = smov 0  }
   0x6 LB: > { %s259_s12 = sadd.s32 4294967295, %s451_s11   ;;  %s260_s13 = sadd.s32 4294967294, %s451_s11   ;;  %s451_s11 = sphi %s477_s11, %s17_s11   ;;  %s447_s10 = sphi %s475_s10, %s657_s10   ;;  %s443_s9 = sphi %s473_s9, %s656_s9   ;;  %s439_s8 = sphi %s471_s8, %s655_s8   ;;  %s435_s7 = sphi %s469_s7, %s654_s7   ;;  %s431_s6 = sphi %s467_s6, %s653_s6  }
   0x7   : > { %s29_s14 = sadd.s32 1, %s447_s10  ;;  %s38_s15 = sadd.s32 1, %s439_s8 }
   0x8   : > { %p31_p0 = scmp.ge.s32.totalorder %s29_s14, 2  ;;  %p45_p1 = scmp.ne.s32.totalorder %s439_s8, %s435_s7 }
   0x9   : > { %p46_p2 = scmp.eq.s32.totalorder %s451_s11, 0  ;;  %p51_p3 = scmp.ne.s32.totalorder %s435_s7, %s431_s6 }
   0xa   : > { %s659_s14 = smov (%p31_p0, %s29_s14), 0  ;;  %p52_p5 = scmp.eq.s32.totalorder %s259_s12, 0 }
   0xb   : > { %p508_p4 = por %p46_p2, %p45_p1  ;;  %s33_s17 = ssub.s32 %s447_s10, %s659_s14 }
   0xc   : > { %p77_p6 = scmp.eq.s32.totalorder %s259_s12, 1  ;;  %p36_p7 = scmp.eq.s32.totalorder %s33_s17, 0 }
   0xd   : > { %p514_p8 = por %p52_p5, %p51_p3  ;;  %p83_p10 = scmp.eq.s32.totalorder %s260_s13, 1 }
   0xe   : > { %p518_p9 = por %p77_p6, %p45_p1  ;;  %p287_p13 = scmp.lt.s32.totalorder %s451_s11, 2 }
   0xf   : > { %s523_s20 = scalar_select %p36_p7, %s439_s8, %s38_s15  }
  0x10   : > { %s646_s19 = scalar_select %p518_p9, 1, 0 }
  0x11   : > { %p525_p11 = por %p83_p10, %p51_p3  ;;  %s103_s22 = sand.u32 1, %s439_s8  }
  0x12   : > { %s272_s23 = smul.u32 6, %s103_s22  ;;  %p535_p0 = pnand %p287_p13, %p508_p4 }
  0x13   : > { %s647_s21 = scalar_select %p525_p11, 1, 0 }
  0x14   : > { %s273_s24 = smul.u32 96, %s447_s10  ;;  %s107_s29 = scalar_lea.vmem [#allocation2], %s272_s23 }
  0x15   : > { %s115_s30 = sshll.u32 %s107_s29, 4  ;;  %s547_s2 = scalar_lea.sflag [#allocation3], %s103_s22  ;;  %s544_s30 = int_to_ptr.vmem [resolvable:$true] %s115_s30 }
  0x16   : > { %s542_s28 = scalar_lea.hbm %s641_s0, %s273_s24  ;;  %p341_p3 = pneg %p535_p0 }
  0x17   : > { %s339_s3 = scalar_lea.hbm %s542_s28, 96  ;;  %s344_s12 = scalar_lea.hbm %s641_s0, 192 }
  0x18   : > { %p340_p2 = scmp.ne.s32.totalorder %s542_s28, %s339_s3  ;;  %p345_p6 = scmp.lt.u32.totalorder %s542_s28, %s641_s0 }
  0x19   : > { %p346_p7 = scmp.lt.u32.totalorder %s344_s12, %s339_s3  ;;  %p348_p13 = scmp.lt.u32.totalorder %s339_s3, %s542_s28 }
  0x1a   : > { %p342_p4 = pnand %p341_p3, %p340_p2 }
  0x1b   : > { %p347_p10 = por %p346_p7, %p345_p6 }
  0x1c   : > { %p343_p5 = pneg %p342_p4 }
  0x1d   : > { %p349_p12 = por %p348_p13, %p347_p10 }
  0x1f   : > { %p350_p1 = pnand %p349_p12, %p343_p5 }
  0x21   : > { %353 = shalt.err (!%p350_p1)
}
  0x22   : > { %s354_s16 = scalar_lea.vmem %s544_s30, 96  ;;  %s453_s17 = smov [#allocation2]  }
  0x23   : > { %p355_p2 = scmp.ne.s32.totalorder %s544_s30, %s354_s16  ;;  %s359_s22 = sshll.u32 %s453_s17, 4  ;;  %s360_s22 = int_to_ptr.vmem [resolvable:$false] %s359_s22 }
  0x24   : > { %s361_s23 = scalar_lea.vmem %s360_s22, 192  ;;  %p362_p9 = scmp.lt.s32.totalorder %s544_s30, %s360_s22 }
  0x25   : > { %p357_p4 = pnand %p355_p2, %p341_p3  ;;  %p363_p6 = scmp.lt.s32.totalorder %s361_s23, %s354_s16 }
  0x27   : > { %p358_p11 = pneg %p357_p4  ;;  %p364_p7 = por %p363_p6, %p362_p9 }
  0x29   : > { %p365_p10 = pnand %p364_p7, %p358_p11 }
  0x2b   : > { %368 = shalt.err (!%p365_p10)
}
  0x2c   : > { %s454_s24 = smov 32   ;;  %s455_s26 = smov 2  }
  0x2d   : > { %282 = dma.hbm_to_vmem [thread:$0]  (!%p535_p0), %s542_s28, 96, %s544_s30, %s547_s2, %s454_s24, %s454_s24, %s455_s26  }
  0x2e   : > { %p123_p12 = scmp.lt.s32.totalorder %s451_s11, 3  ;;  %p649_p1 = scmp.ge.s32.totalorder %s451_s11, 1 }
  0x30   : > { %p124_p3 = pnand %p649_p1, %p123_p12 }
  0x31   : > { %s579_s27 = sand.u32 (!%p124_p3), 1, %s435_s7  }
  0x32   : > { %127 = sbr.rel (%p124_p3) target bundleno = 86 (0x56), region = 24  ;;  %s130_s3 = scalar_lea.sflag (!%p124_p3), [#allocation3], %s579_s27 }
  0x33   : > { %s274_s29 = smul.u32 (!%p124_p3), 6, %s579_s27 }
  0x35   : > { %s133_s4 = scalar_lea.vmem (!%p124_p3), [#allocation2], %s274_s29 }
  0x39   : > { %422 = dma.done.wait (%p514_p8), %s130_s3, 96  }
  0x3a   : > { %424 = vsyncadd (%p514_p8), %s130_s3, 4294967200  ;;  %s265_s25 = sshll.u32 %s579_s27, 1  ;;  %v152_v0 = vld [vmem:[%s133_s4] sm:$0x3]  ;;  %v266_v1 = vld [vmem:[%s133_s4 + $0x2] sm:$0x3] }
  0x3b   : > { %v267_v2 = vld [vmem:[%s133_s4 + $0x4] sm:$0x3]  ;;  %v157_v3 = vmul.f32 0.2989, %v152_v0  ;;  %v158_v4 = vmul.f32 0.587, %v266_v1 }
  0x3c   : > { %v160_v5 = vmul.f32 0.114, %v267_v2  ;;  %s151_s28 = scalar_lea.vmem [#allocation5], %s265_s25  ;;  %s269_s2 = sshll.u32 %s443_s9, 5 }
  0x3d   : > { %s178_s30 = sshll.u32 %s151_s28, 4  ;;  %v159_v6 = vadd.f32 %v158_v4, %v157_v3  ;;  %s594_s12 = scalar_lea.hbm %s642_s1, %s269_s2  ;;  %s589_s30 = int_to_ptr.vmem [resolvable:$true] %s178_s30 }
  0x3e   : > { %s164_s13 = scalar_lea.sflag [#allocation4], %s579_s27  ;;  %s369_s15 = scalar_lea.vmem %s589_s30, 32 }
  0x3f   : > { %v161_v7 = vadd.f32 %v160_v5, %v159_v6  ;;  %p370_p8 = scmp.ne.s32.totalorder %s589_s30, %s369_s15  ;;  %p650_p9 = scmp.ne.s32.totalorder %s646_s19, 0 }
  0x40   : > { %s456_s9 = smov [#allocation5]  }
  0x41   : > { %162 = vst [vmem:[%s151_s28] sm:$0x3] %v161_v7  ;;  %p371_p11 = pnand %p370_p8, %p650_p9  ;;  %s373_s16 = sshll.u32 %s456_s9, 4  ;;  %s374_s16 = int_to_ptr.vmem [resolvable:$false] %s373_s16 }
  0x42   : > { %s375_s17 = scalar_lea.vmem %s374_s16, 64  ;;  %p376_p5 = scmp.lt.s32.totalorder %s589_s30, %s374_s16 }
  0x43   : > { %p372_p0 = pneg %p371_p11  ;;  %p377_p13 = scmp.lt.s32.totalorder %s375_s17, %s369_s15 }
  0x45   : > { %p378_p2 = por %p377_p13, %p376_p5 }
  0x47   : > { %p379_p4 = pnand %p378_p2, %p372_p0 }
  0x49   : > { %382 = shalt.err (!%p379_p4)
}
  0x4a   : > { %s383_s22 = scalar_lea.hbm %s594_s12, 32  ;;  %s387_s26 = scalar_lea.hbm %s642_s1, 64 }
  0x4b   : > { %p384_p6 = scmp.ne.s32.totalorder %s594_s12, %s383_s22  ;;  %p388_p12 = scmp.lt.u32.totalorder %s594_s12, %s642_s1 }
  0x4c   : > { %p389_p1 = scmp.lt.u32.totalorder %s387_s26, %s383_s22  ;;  %p391_p8 = scmp.lt.u32.totalorder %s383_s22, %s594_s12 }
  0x4d   : > { %p385_p7 = pnand %p384_p6, %p650_p9 }
  0x4e   : > { %p390_p3 = por %p389_p1, %p388_p12 }
  0x4f   : > { %p386_p10 = pneg %p385_p7 }
  0x50   : > { %p392_p11 = por %p391_p8, %p390_p3 }
  0x52   : > { %p393_p0 = pnand %p392_p11, %p386_p10 }
  0x54   : > { %396 = shalt.err (!%p393_p0)
}
  0x55   : > { %277 = dma.vmem_to_hbm [thread:$0]  (%p650_p9), %s589_s30, 32, %s594_s12, %s164_s13  }
  0x56 PF: > { %s190_s3 = sand.u32 1, %s431_s6   ;;  %p651_p5 = scmp.ne.s32.totalorder %s647_s21, 0 }
  0x57   : > { %p652_p13 = scmp.ge.s32.totalorder %s451_s11, 2  ;;  %s191_s4 = scalar_lea.sflag [#allocation4], %s190_s3 }
  0x59   : > { %p284_p2 = pnand %p652_p13, %p651_p5 }
  0x5b   : > { %426 = dma.done.wait (!%p284_p2), %s191_s4, 32  }
  0x5c   : > { %428 = vsyncadd (!%p284_p2), %s191_s4, 4294967264  ;;  %s17_s11 = sadd.s32 1, %s451_s11   ;;  %s653_s6 = smov %s435_s7 }
  0x5d   : > { %p14_p4 = scmp.ge.s32.totalorder %s17_s11, 4   ;;  %s654_s7 = smov %s439_s8 }
  0x5e   : > { %s655_s8 = smov %s523_s20  ;;  %s656_s9 = smov %s447_s10 }
  0x5f   : > { %s657_s10 = smov %s659_s14  ;;  %16 = sbr.rel (!%p14_p4) target bundleno = 6 (0x6), region = 71 }
  0x66   :  { %196 = vsyncpa [#allocation3], 1 }
  0x67   :  { %198 = vsyncpa [#allocation3 + $0x1], 1 }
  0x68   :  { %199 = vsyncpa [#allocation4], 1 }
  0x69   :  { %201 = vsyncpa [#allocation4 + $0x1], 1 }

</bundles_post_ra>
